<compile_context>
chip_gen: v7x
topology: tpu7x:2x2x1
jax: 0.10.0
libtpu: 0.0.40
codegen_flags: <defaults>
</compile_context>

<pallas_src>
import jax
import jax.numpy as jnp
from jax import lax
from jax.experimental import pallas as pl
from jax.experimental.pallas import tpu as pltpu

_LANE = 128


def _round_down(n, m):
    return (n // m) * m


def _net_kernel(x_ref, w1_ref, b1_ref, w2_ref, b2_ref, o_ref):
    # x_ref : (TB, F) natural-layout input tile
    # w1_ref: (8, F)  first-layer weight (torch (out,in) layout, zero-padded to 8 rows)
    # b1_ref: (8, 1)  first-layer bias column (rows 2..7 zero)
    # w2_ref: (2,)    second-layer weight, SMEM scalars
    # b2_ref: (1,)    second-layer bias, SMEM scalar
    # o_ref : (1, TB) lane-dense output tile
    h = lax.dot_general(
        w1_ref[...], x_ref[...],
        dimension_numbers=(((1,), (1,)), ((), ())),
        preferred_element_type=jnp.float32)                 # (8, TB) on the MXU

    # Fused epilogue on the 2 valid rows: bias add + ELU(alpha=0.5).
    h2 = h[0:2, :] + b1_ref[0:2, :]                         # (2, TB)
    alpha = jnp.float32(0.5)
    # Clamp the exp argument so garbage lanes of a ragged last tile never see inf
    # (NaN in those lanes is harmless: they are sliced off in the wrapper).
    e = jnp.where(h2 > 0, h2, alpha * (jnp.exp(jnp.minimum(h2, 0.0)) - 1.0))

    # Second linear (2 -> 1) as two VPU FMAs driven by SMEM scalars.
    y = e[0:1, :] * w2_ref[0] + e[1:2, :] * w2_ref[1] + b2_ref[0]
    o_ref[...] = y.astype(o_ref.dtype)


def net_forward(x, w1, b1, w2, b2, *, target_tile_bytes=4 * 1024 * 1024):
    """Forward pass of Net.

    x : (B, F) float32
    w1: (2, F) float32  (torch nn.Linear layout: (out_features, in_features))
    b1: (2,)   float32
    w2: (1, 2) float32
    b2: (1,)   float32
    returns (B, 1) float32
    """
    B, F = x.shape
    x = x.astype(jnp.float32)

    # F-aware batch-tile size: ~target_tile_bytes of x per pipeline buffer,
    # capped so the double-buffered x footprint stays <= ~24 MiB (v7x: 64 MiB VMEM).
    bytes_per_row = 4 * F
    tb = max(_LANE, _round_down(max(target_tile_bytes // bytes_per_row, _LANE), _LANE))
    tb_cap = max(_LANE, _round_down((24 * 1024 * 1024) // (2 * bytes_per_row), _LANE))
    tb = min(tb, tb_cap)

    if B <= tb:
        # Single grid step; full-array blocks need no 8/128 alignment and no padding.
        tb = B
        grid_n = 1
    else:
        grid_n = pl.cdiv(B, tb)
    b_out = grid_n * tb  # output array is tile-aligned -> all stores in-bounds

    # Pad w1 to 8 output rows (clean sublane alignment; zero rows are free on the MXU)
    # and lay b1 out as an (8, 1) column for a single broadcast bias-add.
    w1_pad = jnp.pad(w1.astype(jnp.float32), ((0, 8 - w1.shape[0]), (0, 0)))
    b1_col = jnp.pad(b1.astype(jnp.float32).reshape(2, 1), ((0, 6), (0, 0)))

    # Explicit scoped-VMEM budget (v5e default is only 16 MiB).
    vmem_need = 2 * tb * bytes_per_row + 2 * tb * 4 + 2 * 8 * F * 4 + (1 << 20)
    vmem_limit = int(min(max(vmem_need, 16 * 1024 * 1024), 48 * 1024 * 1024))

    smem = pl.BlockSpec(memory_space=pltpu.MemorySpace.SMEM)

    y_pad = pl.pallas_call(
        _net_kernel,
        out_shape=jax.ShapeDtypeStruct((1, b_out), jnp.float32),
        grid=(grid_n,),
        in_specs=[
            pl.BlockSpec((tb, F), lambda i: (i, 0)),   # natural-layout x tile (pipelined)
            pl.BlockSpec((8, F), lambda i: (0, 0)),    # w1 resident across all steps
            pl.BlockSpec((8, 1), lambda i: (0, 0)),    # b1 column resident
            smem,                                      # w2 scalars
            smem,                                      # b2 scalar
        ],
        out_specs=pl.BlockSpec((1, tb), lambda i: (0, i)),
        compiler_params=pltpu.CompilerParams(
            dimension_semantics=("parallel",),         # megacore sharding on v7x
            vmem_limit_bytes=vmem_limit,
        ),
        cost_estimate=pl.CostEstimate(
            flops=4 * b_out * F + 8 * b_out,
            transcendentals=2 * b_out,
            bytes_accessed=4 * (B * F + b_out + 8 * F + 8 + 2 + 1),
        ),
    )(x, w1_pad, b1_col,
      w2.reshape(2).astype(jnp.float32),
      b2.astype(jnp.float32))

    return y_pad[0, :B].reshape(B, 1)


def reference_forward(x, w1, b1, w2, b2):
    h = x @ w1.T + b1
    h = jnp.where(h > 0, h, 0.5 * (jnp.exp(h) - 1.0))
    return h @ w2.T + b2


def init_params(features_len, key):
    # Deterministic init mimicking torch.nn.Linear defaults (uniform +/- 1/sqrt(fan_in)),
    # weights kept in torch (out_features, in_features) layout.
    k1, k2, k3, k4 = jax.random.split(key, 4)
    bound1 = 1.0 / float(features_len) ** 0.5
    w1 = jax.random.uniform(k1, (2, features_len), jnp.float32, -bound1, bound1)
    b1 = jax.random.uniform(k2, (2,), jnp.float32, -bound1, bound1)
    bound2 = 1.0 / 2.0 ** 0.5
    w2 = jax.random.uniform(k3, (1, 2), jnp.float32, -bound2, bound2)
    b2 = jax.random.uniform(k4, (1,), jnp.float32, -bound2, bound2)
    return w1, b1, w2, b2


def _check(x, params, **kwargs):
    out = jax.block_until_ready(net_forward(x, *params, **kwargs))
    ref = reference_forward(x, *params)
    assert out.shape == (x.shape[0], 1), out.shape
    assert jnp.allclose(out, ref, atol=2e-5, rtol=1e-4), (
        f"max abs err {jnp.max(jnp.abs(out - ref))}")


if __name__ == "__main__":
    key = jax.random.PRNGKey(0)
    kx, kp, kx2, kx3 = jax.random.split(key, 4)

    batch, features_len = 8, 32
    params = init_params(features_len, kp)

    # Primary small-shape check (single full-array block).
    x = jax.random.normal(kx, (batch, features_len), jnp.float32)
    _check(x, params)

    # Multi-tile path (tile divides batch exactly).
    x2 = jax.random.normal(kx2, (256, features_len), jnp.float32)
    _check(x2, params, target_tile_bytes=_LANE * 4 * features_len)

    # Ragged-last-tile path (batch not a multiple of the tile).
    x3 = jax.random.normal(kx3, (200, features_len), jnp.float32)
    _check(x3, params, target_tile_bytes=_LANE * 4 * features_len)

    print("KERNEL_OK")
</pallas_src>

<mosaic_0001>
module attributes {stable_mosaic.version = 11 : i64} {
  func.func @_net_kernel(%arg0: i32, %arg1: memref<8x32xf32, #tpu.memory_space<vmem>>, %arg2: memref<8x32xf32, #tpu.memory_space<vmem>>, %arg3: memref<8x1xf32, #tpu.memory_space<vmem>>, %arg4: memref<2xf32, #tpu.memory_space<smem>>, %arg5: memref<1xf32, #tpu.memory_space<smem>>, %arg6: memref<1x8xf32, #tpu.memory_space<vmem>>) attributes {dimension_semantics = [#tpu.dimension_semantics<parallel>], iteration_bounds = array<i64: 1>, scalar_prefetch = 0 : i64, scratch_operands = 0 : i64, tpu.core_type = #tpu.core_type<tc>, window_params = [{transform_indices = @transform_0, window_bounds = array<i64: 8, 32>}, {pipeline_mode = #tpu.pipeline_mode<synchronous>, transform_indices = @transform_1, window_bounds = array<i64: 8, 32>}, {pipeline_mode = #tpu.pipeline_mode<synchronous>, transform_indices = @transform_2, window_bounds = array<i64: 8, 1>}, {transform_indices = @transform_3, window_bounds = array<i64: 2>}, {transform_indices = @transform_4, window_bounds = array<i64: 1>}, {transform_indices = @transform_5, window_bounds = array<i64: 1, 8>}]} {
    %c0 = arith.constant 0 : index
    %c0_0 = arith.constant 0 : index
    %0 = vector.load %arg2[%c0, %c0_0] : memref<8x32xf32, #tpu.memory_space<vmem>>, vector<8x32xf32>
    %c0_1 = arith.constant 0 : index
    %c0_2 = arith.constant 0 : index
    %1 = vector.load %arg1[%c0_1, %c0_2] : memref<8x32xf32, #tpu.memory_space<vmem>>, vector<8x32xf32>
    %cst = arith.constant dense<0.000000e+00> : vector<8x8xf32>
    %2 = tpu.matmul %0, %1, %cst {dimension_numbers = #tpu.dot_dimension_numbers<[1], [1], [0], [0], [0, 0, 1, 0], [], []>} : vector<8x32xf32>, vector<8x32xf32>, vector<8x8xf32> -> vector<8x8xf32>
    %3 = vector.extract_strided_slice %2 {offsets = [0, 0], sizes = [2, 8], strides = [1, 1]} : vector<8x8xf32> to vector<2x8xf32>
    %c0_3 = arith.constant 0 : index
    %c0_4 = arith.constant 0 : index
    %4 = vector.load %arg3[%c0_3, %c0_4] : memref<8x1xf32, #tpu.memory_space<vmem>>, vector<2x1xf32>
    %5 = vector.broadcast %4 : vector<2x1xf32> to vector<2x8xf32>
    %6 = arith.addf %3, %5 : vector<2x8xf32>
    %cst_5 = arith.constant 0.000000e+00 : f32
    %7 = vector.broadcast %cst_5 : f32 to vector<2x8xf32>
    %8 = arith.cmpf ogt, %6, %7 : vector<2x8xf32>
    %cst_6 = arith.constant 0.000000e+00 : f32
    %9 = vector.broadcast %cst_6 : f32 to vector<2x8xf32>
    %10 = arith.minimumf %6, %9 : vector<2x8xf32>
    %11 = math.exp %10 : vector<2x8xf32>
    %cst_7 = arith.constant 1.000000e+00 : f32
    %12 = vector.broadcast %cst_7 : f32 to vector<2x8xf32>
    %13 = arith.subf %11, %12 : vector<2x8xf32>
    %cst_8 = arith.constant 5.000000e-01 : f32
    %14 = vector.broadcast %cst_8 : f32 to vector<2x8xf32>
    %15 = arith.mulf %14, %13 : vector<2x8xf32>
    %16 = arith.select %8, %6, %15 : vector<2x8xi1>, vector<2x8xf32>
    %17 = vector.extract_strided_slice %16 {offsets = [0, 0], sizes = [1, 8], strides = [1, 1]} : vector<2x8xf32> to vector<1x8xf32>
    %c0_9 = arith.constant 0 : index
    %18 = memref.load %arg4[%c0_9] : memref<2xf32, #tpu.memory_space<smem>>
    %19 = vector.broadcast %18 : f32 to vector<1x8xf32>
    %20 = arith.mulf %17, %19 : vector<1x8xf32>
    %21 = vector.extract_strided_slice %16 {offsets = [1, 0], sizes = [1, 8], strides = [1, 1]} : vector<2x8xf32> to vector<1x8xf32>
    %c1 = arith.constant 1 : index
    %22 = memref.load %arg4[%c1] : memref<2xf32, #tpu.memory_space<smem>>
    %23 = vector.broadcast %22 : f32 to vector<1x8xf32>
    %24 = arith.mulf %21, %23 : vector<1x8xf32>
    %25 = arith.addf %20, %24 : vector<1x8xf32>
    %c0_10 = arith.constant 0 : index
    %26 = memref.load %arg5[%c0_10] : memref<1xf32, #tpu.memory_space<smem>>
    %27 = vector.broadcast %26 : f32 to vector<1x8xf32>
    %28 = arith.addf %25, %27 : vector<1x8xf32>
    %c0_11 = arith.constant 0 : index
    %c0_12 = arith.constant 0 : index
    %29 = vector.load %arg6[%c0_11, %c0_12] : memref<1x8xf32, #tpu.memory_space<vmem>>, vector<1x8xf32>
    tpu.vector_store %arg6[%c0_11, %c0_12], %28 {strides = array<i32>} : memref<1x8xf32, #tpu.memory_space<vmem>>, vector<1x8xf32>,
    return
  }
  func.func @transform_0(%arg0: i32) -> (i32, i32) {
    %c0_i32 = arith.constant 0 : i32
    %c0_i32_0 = arith.constant 0 : i32
    return %arg0, %c0_i32 : i32, i32
  }
  func.func @transform_1(%arg0: i32) -> (i32, i32) {
    %c0_i32 = arith.constant 0 : i32
    %c0_i32_0 = arith.constant 0 : i32
    %c0_i32_1 = arith.constant 0 : i32
    return %c0_i32, %c0_i32_0 : i32, i32
  }
  func.func @transform_2(%arg0: i32) -> (i32, i32) {
    %c0_i32 = arith.constant 0 : i32
    %c0_i32_0 = arith.constant 0 : i32
    %c0_i32_1 = arith.constant 0 : i32
    return %c0_i32, %c0_i32_0 : i32, i32
  }
  func.func @transform_3(%arg0: i32) -> i32 {
    %c0_i32 = arith.constant 0 : i32
    %c0_i32_0 = arith.constant 0 : i32
    return %c0_i32 : i32
  }
  func.func @transform_4(%arg0: i32) -> i32 {
    %c0_i32 = arith.constant 0 : i32
    %c0_i32_0 = arith.constant 0 : i32
    return %c0_i32 : i32
  }
  func.func @transform_5(%arg0: i32) -> (i32, i32) {
    %c0_i32 = arith.constant 0 : i32
    %c0_i32_0 = arith.constant 0 : i32
    return %c0_i32, %arg0 : i32, i32
  }
}

</mosaic_0001>

<bundles_post_ra>
// kernel: tpu_custom_call.1
= control target key start
LH: loop header
LB: loop body
LE: loop exit
PB: predicated region body
PF: predicated region fallthrough
CT: control target
= control target key end

     0   :  { %11 = vsyncpa [#allocation5], 0  ;;  %s277_s0 = inlined_call_operand.vmem [shape: f32[8,32], index: 0, kind: input, shape index: {}]   ;;  %s278_s1 = inlined_call_operand.vmem [shape: f32[8,32], index: 1, kind: input, shape index: {}]   ;;  %s279_s2 = inlined_call_operand.vmem [shape: f32[8,1], index: 2, kind: input, shape index: {}]   ;;  %s280_s3 = inlined_call_operand.vmem [shape: f32[2], index: 3, kind: input, shape index: {}]   ;;  %s281_s4 = inlined_call_operand.<no memory space> [shape: f32[1], index: 4, kind: input, shape index: {}]   ;;  %s282_s5 = inlined_call_operand.hbm [shape: f32[1,8], index: 5, kind: output, shape index: {}]  }
   0x1   :  { %12 = vsyncpa [#allocation4], 0  ;;  %s25_s20 = sshll.u32 %s280_s3, 4  ;;  %s26_s20 = int_to_ptr.vmem [resolvable:$true] %s25_s20 }
   0x2   :  { %s177_s21 = scalar_lea.vmem %s26_s20, 16  ;;  %p182_p1 = scmp.lt.s32.totalorder %s26_s20, %s26_s20 }
   0x3   :  { %p178_p0 = scmp.ne.s32.totalorder %s26_s20, %s177_s21  ;;  %p183_p2 = scmp.lt.s32.totalorder %s177_s21, %s177_s21 }
   0x5   :  { %p184_p3 = por %p183_p2, %p182_p1 }
   0x7   :  { %p185_p4 = pnand %p184_p3, %p178_p0 }
   0x9   :  { %188 = shalt.err (!%p185_p4)
}
   0xa   :  { %s215_s22 = smov [#allocation3]  }
   0xb   :  { %28 = dma.vmem_to_smem %s26_s20, 16, %s215_s22, [#allocation5]  }
   0xc   :  { %211 = dma.done.wait [#allocation5], 16  }
   0xd   :  { %212 = vsyncadd [#allocation5], 4294967280 }
   0xe   :  { %34 = sfence }
   0xf   :  { %v36_v0 = vld [vmem:[%s277_s0] sm:$0xff]  ;;  %vm37_vm0 = vcmask 261120   ;;  %v216_v1 = vmov 0.0   ;;  %vm217_vm1 = vmmov 0   ;;  %v218_v4 = vmov 0   ;;  %s161_s0 = sld [smem:[#allocation3 + $0x1]] }
  0x10   :  { %164 = vmatprep.subr.mxu0 %v216_v1  ;;  %166 = vmatprep.mubr.msk.f32.mxu0 %vm217_vm1, %v216_v1  ;;  %v114_v2 = vld [vmem:[%s279_s2] sm:$0x3]  ;;  %s128_s28 = sld [smem:[#allocation3]]  ;;  %v139_v20 = vstv %s281_s4  ;;  %s219_s29 = smov [#allocation6]   ;;  %vm141_vm3 = vcmask 57344  }
  0x11   :  { %165 = vmatpush3.xpose.msk.msra.mxu0 %vm37_vm0, %v36_v0  ;;  %v35_v3 = vld [vmem:[%s278_s1] sm:$0xff]  ;;  %174 = vset.pattern.permute.xlu0 %v218_v4  ;;  %s149_s30 = sshll.u32 %s219_s29, 4  ;;  %s150_s30 = int_to_ptr.vmem [resolvable:$true] %s149_s30 }
  0x12   :  { %117 = vperm.xlu0 %174, %v114_v2   ;;  %s189_s6 = scalar_lea.vmem %s150_s30, 16  ;;  %s193_s7 = scalar_lea.vmem %s150_s30, 32 }
  0x13   :  { %p190_p5 = scmp.ne.s32.totalorder %s150_s30, %s189_s6  ;;  %p194_p6 = scmp.lt.s32.totalorder %s150_s30, %s150_s30 }
  0x14   :  { %167 = vmatmul.mubr.msk.f32.vlgmr.msra.gmra.mrb[0].mxu0 %vm37_vm0, %v35_v3  ;;  %p195_p7 = scmp.lt.s32.totalorder %s193_s7, %s189_s6 }
  0x15   :  { %v132_v14 = vstv %s161_s0 }
  0x16   :  { %v129_v16 = vstv %s128_s28  ;;  %p196_p8 = por %p195_p7, %p194_p6 }
  0x18   :  { %p197_p9 = pnand %p196_p8, %p190_p5 }
  0x91   :  { %v118_v5 = vpop.permute.xlu0 %117 }
  0xe7   :  { %v110_v6 = vpop.f32.mrb[0].mxu0 }
  0xe8   :  { %v120_v7 = vadd.f32 %v118_v5, %v110_v6  ;;  %v168_v8 = vpop.f32.mrb[1].mxu0 }
  0xea   :  { %v122_v9 = vmin.f32 %v120_v7, 0.0  ;;  %vm121_vm2 = vcmp.gt.f32.partialorder %v120_v7, 0.0 }
  0xec   :  { %v123_v10 = vmul.f32 1.442695, %v122_v9 }
  0xee   :  { %175 = vpow2.f32 %v123_v10 }
  0xf8   :  { %v176_v11 = vpop.eup %175 }
  0xf9   :  { %v160_v12 = vadd.f32 -1.0, %v176_v11 }
  0xfb   :  { %v126_v13 = vmul.f32 0.5, %v160_v12 }
  0xfd   :  { %v127_v15 = vsel %vm121_vm2, %v120_v7, %v126_v13 }
  0xfe   :  { %v133_v17 = vmul.f32 %v132_v14, %v127_v15  ;;  %v130_v18 = vmul.f32 %v129_v16, %v127_v15 }
 0x100   :  { %v135_v19 = vrot.slane %v133_v17, 1 }
 0x102   :  { %v137_v21 = vadd.f32 %v135_v19, %v130_v18 }
 0x104   :  { %v140_v22 = vadd.f32 %v139_v20, %v137_v21 }
 0x106   :  { %142 = vst.msk [vmem:[#allocation6] sm:$0x1] %vm141_vm3, %v140_v22 }
 0x107   :  { %200 = shalt.err (!%p197_p9)
}
 0x108   :  { %s201_s10 = scalar_lea.hbm %s282_s5, 16 }
 0x109   :  { %p202_p10 = scmp.ne.s32.totalorder %s282_s5, %s201_s10  ;;  %p205_p11 = scmp.lt.u32.totalorder %s201_s10, %s282_s5 }
 0x10b   :  { %p207_p12 = pnand %p205_p11, %p202_p10 }
 0x10d   :  { %210 = shalt.err (!%p207_p12)
}
 0x10e   :  { %152 = dma.vmem_to_hbm [thread:$0]  %s150_s30, 16, %s282_s5, [#allocation4]  }
 0x10f   :  { %213 = dma.done.wait [#allocation4], 16  }
 0x110   :  { %214 = vsyncadd [#allocation4], 4294967280 }
 0x111   :  { %156 = vsyncpa [#allocation4], 1 }
 0x112   :  { %157 = vsyncpa [#allocation5], 1 }

</bundles_post_ra>
